<compile_context>
chip_gen: v6e
topology: v6e:2x2x1
jax: 0.10.0
libtpu: 0.0.40
codegen_flags: <defaults>
</compile_context>

<pallas_src>
import functools

import jax
import jax.numpy as jnp
from jax.experimental import pallas as pl
from jax.experimental.pallas import tpu as pltpu


# ---------------------------------------------------------------------------
# Kernel body (shared by all layouts; only the reduction axis differs).
# ---------------------------------------------------------------------------
def _zero_softmax_kernel(x_ref, o_ref, *, eps, axis):
    x = x_ref[...].astype(jnp.float32)
    e = jnp.exp(x) - 1.0                          # EUP transcendental
    p = e * e                                     # VPU
    s = jnp.sum(p, axis=axis, keepdims=True) + eps
    # Hoisted normalization: approximate reciprocal on the reduced row (EUP
    # slot, nearly free) + one Newton-Raphson step back to ~f32 accuracy,
    # then a VPU multiply — instead of a full-tile divide.
    inv = pl.reciprocal(s, approx=True)
    inv = inv * (2.0 - s * inv)
    o_ref[...] = (p * inv).astype(o_ref.dtype)


# ---------------------------------------------------------------------------
# VMEM budgeting & tile selection.
# ---------------------------------------------------------------------------
def _vmem_budget():
    """Returns (pipeline_budget_bytes, vmem_limit_bytes) for this chip."""
    cap = None
    try:
        cap = int(pltpu.get_tpu_info().vmem_capacity_bytes)
    except Exception:
        cap = None
    if not cap:
        cap = 64 << 20            # conservative fallback = v7x per-TC VMEM
    # Pipelined footprint ~ 2 (double-buffer) x (in + out) x block_bytes.
    pipeline_budget = min(cap // 4, 32 << 20)
    # Scoped limit for Mosaic: buffers + headroom, well under physical VMEM.
    vmem_limit = min(cap * 3 // 4, max(32 << 20, pipeline_budget * 2 + (16 << 20)))
    return pipeline_budget, vmem_limit


def _round_up(v, q):
    return ((v + q - 1) // q) * q


def _pick_tile(n_units, unit_bytes, quantum, budget_bytes, min_units,
               target_steps=8):
    """Tile size (in multiples of `quantum`) along the single tiled axis.

    Largest tile that (a) keeps the double-buffered in+out blocks inside
    `budget_bytes` (~4x block bytes), (b) still leaves ~target_steps grid
    steps so the BlockSpec pipeline overlaps DMA with compute (>=4 steps per
    TensorCore on v7x's 2-TC megacore), and (c) never drops below
    `min_units`, keeping tiles lane/sublane-dense and amortizing the
    ~0.35us per-step overhead.  Tiny problems collapse to one full block.
    """
    vmem_max = max(quantum,
                   (budget_bytes // max(unit_bytes, 1)) // quantum * quantum)
    pref = max(_round_up(min_units, quantum),
               _round_up(pl.cdiv(n_units, target_steps), quantum))
    tile = min(vmem_max, pref, _round_up(n_units, quantum))
    if tile >= n_units:
        return n_units            # single full-extent block, no raggedness
    return max(tile, quantum)


def _call(kernel, x2, block_shape, index_map, grid, vmem_limit, cost):
    return pl.pallas_call(
        kernel,
        out_shape=jax.ShapeDtypeStruct(x2.shape, x2.dtype),
        grid_spec=pltpu.PrefetchScalarGridSpec(
            num_scalar_prefetch=0,
            grid=grid,
            in_specs=[pl.BlockSpec(block_shape, index_map)],
            out_specs=pl.BlockSpec(block_shape, index_map),
        ),
        compiler_params=pltpu.CompilerParams(
            dimension_semantics=("parallel",),
            vmem_limit_bytes=int(vmem_limit)),
        cost_estimate=cost,
    )(x2)


# ---------------------------------------------------------------------------
# Public wrapper — Pallas equivalent of ZeroSoftmax.forward(x, dim, eps).
# ---------------------------------------------------------------------------
def zero_softmax(x, dim=0, eps=1e-5):
    x = jnp.asarray(x)
    nd = x.ndim
    if nd == 0:
        p = jnp.square(jnp.exp(x) - 1.0)
        return p / (p + eps)
    dim = dim % nd

    itemsize = jnp.dtype(x.dtype).itemsize
    sublanes = max(8, 32 // max(itemsize, 1))     # 8 (f32) / 16 (bf16) / 32 (i8)
    budget, vmem_limit = _vmem_budget()

    n_elems = x.size
    cost = pl.CostEstimate(
        flops=4 * n_elems,
        transcendentals=n_elems,
        bytes_accessed=2 * n_elems * itemsize,
    )
    kern = functools.partial(_zero_softmax_kernel, eps=float(eps))

    if dim == nd - 1:
        # ------------------------------------------------------------------
        # Native last-axis path: keep the natural (rows, D) layout and reduce
        # over lanes in-kernel — no wrapper transposes (saves two HBM passes).
        # ------------------------------------------------------------------
        d = x.shape[-1]
        r = max(1, n_elems // d)
        x2 = x.reshape(r, d)
        min_rows = max(8, min(4096, (1 << 16) // max(d, 1)))
        tr = _pick_tile(r, 4 * d * itemsize, 8, budget, min_rows)
        grid = (pl.cdiv(r, tr),)
        y2 = _call(functools.partial(kern, axis=-1),
                   x2, (tr, d), lambda i: (i, 0), grid, vmem_limit, cost)
        return y2.reshape(x.shape)

    # ----------------------------------------------------------------------
    # General path: reduction axis to the front (identity/free for the
    # default dim=0), everything else flattened onto the lane axis.
    # ----------------------------------------------------------------------
    perm = (dim,) + tuple(i for i in range(nd) if i != dim)
    inv_perm = [0] * nd
    for i, ax in enumerate(perm):
        inv_perm[ax] = i
    xt = jnp.transpose(x, perm)                   # no-op when dim == 0
    d = xt.shape[0]
    m = max(1, n_elems // d)

    if d < sublanes and m % 128 == 0:
        # Small reduction extent: a (D, M) tile would occupy only D of the 8
        # sublanes per vreg.  View the data as (D, M/128, 128) so every vreg
        # is fully occupied and the axis-0 reduction is plain VPU adds across
        # D slabs (no XLU sublane reduce).
        m128 = m // 128
        x3 = xt.reshape(d, m128, 128)
        ts = _pick_tile(m128, 4 * d * 128 * itemsize, 8, budget, 8)
        grid = (pl.cdiv(m128, ts),)
        y3 = _call(functools.partial(kern, axis=0),
                   x3, (d, ts, 128), lambda i: (0, i, 0),
                   grid, vmem_limit, cost)
        y = y3.reshape(xt.shape)
    else:
        # Reduction extent on sublanes, all other axes lane-dense.
        x2 = xt.reshape(d, m)
        tm = _pick_tile(m, 4 * d * itemsize, 128, budget, 512)
        grid = (pl.cdiv(m, tm),)
        y2 = _call(functools.partial(kern, axis=0),
                   x2, (d, tm), lambda i: (0, i), grid, vmem_limit, cost)
        y = y2.reshape(xt.shape)

    return jnp.transpose(y, inv_perm)


def _reference(x, dim=0, eps=1e-5):
    """Pure-JAX reference mirroring the PyTorch module exactly."""
    p = jnp.square(jnp.exp(x) - 1.0)
    return p / (jnp.sum(p, axis=dim, keepdims=True) + eps)


if __name__ == "__main__":
    key = jax.random.PRNGKey(0)
    x = jax.random.normal(key, (2, 4, 16, 16), dtype=jnp.float32)

    # Default dim=0 (as in the PyTorch module) plus two other axes to
    # exercise the small-D slab path, the general sublane path (via a
    # wrapper transpose), and the native last-axis path.
    for dim in (0, 1, -1):
        out = jax.block_until_ready(zero_softmax(x, dim=dim))
        ref = jax.block_until_ready(_reference(x, dim=dim))
        assert out.shape == x.shape, (dim, out.shape)
        assert jnp.allclose(out, ref, rtol=1e-4, atol=1e-5), f"mismatch dim={dim}"

    print("KERNEL_OK")
</pallas_src>

<mosaic_0001>
module attributes {stable_mosaic.version = 11 : i64} {
  func.func @_zero_softmax_kernel(%arg0: i32, %arg1: memref<2x8x128xf32, #tpu.memory_space<vmem>>, %arg2: memref<2x8x128xf32, #tpu.memory_space<vmem>>) attributes {dimension_semantics = [#tpu.dimension_semantics<parallel>], iteration_bounds = array<i64: 1>, scalar_prefetch = 0 : i64, scratch_operands = 0 : i64, tpu.core_type = #tpu.core_type<tc>, window_params = [{transform_indices = @transform_0, window_bounds = array<i64: 2, 8, 128>}, {transform_indices = @transform_1, window_bounds = array<i64: 2, 8, 128>}]} {
    %c0 = arith.constant 0 : index
    %c0_0 = arith.constant 0 : index
    %c0_1 = arith.constant 0 : index
    %0 = vector.load %arg1[%c0, %c0_0, %c0_1] : memref<2x8x128xf32, #tpu.memory_space<vmem>>, vector<2x8x128xf32>
    %1 = math.exp %0 : vector<2x8x128xf32>
    %cst = arith.constant 1.000000e+00 : f32
    %2 = vector.broadcast %cst : f32 to vector<2x8x128xf32>
    %3 = arith.subf %1, %2 : vector<2x8x128xf32>
    %4 = arith.mulf %3, %3 : vector<2x8x128xf32>
    %cst_2 = arith.constant dense<0.000000e+00> : vector<8x128xf32>
    %5 = vector.multi_reduction <add>, %4, %cst_2 [0] : vector<2x8x128xf32> to vector<8x128xf32>
    %6 = vector.shape_cast %5 : vector<8x128xf32> to vector<1x8x128xf32>
    %cst_3 = arith.constant 9.99999974E-6 : f32
    %7 = vector.broadcast %cst_3 : f32 to vector<1x8x128xf32>
    %8 = arith.addf %6, %7 : vector<1x8x128xf32>
    %9 = tpu.reciprocal %8 {approx = true} : vector<1x8x128xf32> -> vector<1x8x128xf32>
    %10 = arith.mulf %8, %9 : vector<1x8x128xf32>
    %cst_4 = arith.constant 2.000000e+00 : f32
    %11 = vector.broadcast %cst_4 : f32 to vector<1x8x128xf32>
    %12 = arith.subf %11, %10 : vector<1x8x128xf32>
    %13 = arith.mulf %9, %12 : vector<1x8x128xf32>
    %14 = vector.broadcast %13 : vector<1x8x128xf32> to vector<2x8x128xf32>
    %15 = arith.mulf %4, %14 : vector<2x8x128xf32>
    %c0_5 = arith.constant 0 : index
    %c0_6 = arith.constant 0 : index
    %c0_7 = arith.constant 0 : index
    %16 = vector.load %arg2[%c0_5, %c0_6, %c0_7] : memref<2x8x128xf32, #tpu.memory_space<vmem>>, vector<2x8x128xf32>
    tpu.vector_store %arg2[%c0_5, %c0_6, %c0_7], %15 {strides = array<i32>} : memref<2x8x128xf32, #tpu.memory_space<vmem>>, vector<2x8x128xf32>,
    return
  }
  func.func @transform_0(%arg0: i32) -> (i32, i32, i32) {
    %c0_i32 = arith.constant 0 : i32
    %c0_i32_0 = arith.constant 0 : i32
    %c0_i32_1 = arith.constant 0 : i32
    return %c0_i32, %arg0, %c0_i32_0 : i32, i32, i32
  }
  func.func @transform_1(%arg0: i32) -> (i32, i32, i32) {
    %c0_i32 = arith.constant 0 : i32
    %c0_i32_0 = arith.constant 0 : i32
    %c0_i32_1 = arith.constant 0 : i32
    return %c0_i32, %arg0, %c0_i32_0 : i32, i32, i32
  }
}

</mosaic_0001>

<bundles_post_ra>
// kernel: tpu_custom_call.1
= control target key start
LH: loop header
LB: loop body
LE: loop exit
PB: predicated region body
PF: predicated region fallthrough
CT: control target
= control target key end

     0   :  { %6 = vsyncpa [#allocation3], 0  ;;  %s142_s0 = inlined_call_operand.hbm [shape: f32[2,8,128], index: 0, kind: input, shape index: {}]   ;;  %s143_s1 = inlined_call_operand.hbm [shape: f32[2,8,128], index: 1, kind: output, shape index: {}]  }
   0x1   :  { %7 = vsyncpa [#allocation4], 0  ;;  %s116_s6 = smov [#allocation2]  }
   0x2   :  { %s13_s7 = sshll.u32 %s116_s6, 4  ;;  %s14_s7 = int_to_ptr.vmem [resolvable:$true] %s13_s7 }
   0x3   :  { %s80_s8 = scalar_lea.vmem %s14_s7, 256  ;;  %p85_p1 = scmp.lt.s32.totalorder %s14_s7, %s14_s7 }
   0x4   :  { %p81_p0 = scmp.ne.s32.totalorder %s14_s7, %s80_s8  ;;  %p86_p2 = scmp.lt.s32.totalorder %s80_s8, %s80_s8 }
   0x6   :  { %p87_p3 = por %p86_p2, %p85_p1 }
   0x8   :  { %p88_p4 = pnand %p87_p3, %p81_p0 }
   0xa   :  { %91 = shalt.err (!%p88_p4)
}
   0xb   :  { %s117_s9 = smov 128   ;;  %s118_s10 = smov 8  }
   0xc   :  { %19 = dma.hbm_to_vmem [thread:$0]  %s142_s0, 256, %s14_s7, [#allocation3], %s117_s9, %s117_s9, %s118_s10  }
   0xd   :  { %112 = dma.done.wait [#allocation3], 256  }
   0xe   :  { %113 = vsyncadd [#allocation3], 4294967040  ;;  %v23_v0 = vld [vmem:[#allocation2] sm:$0xff]  ;;  %v24_v1 = vld [vmem:[#allocation2 + $0x8] sm:$0xff]  ;;  %s119_s0 = smov [#allocation5]  }
   0xf   :  { %v25_v2 = vmul.f32 1.442695, %v23_v0  ;;  %v27_v3 = vmul.f32 1.442695, %v24_v1  ;;  %s48_s13 = sshll.u32 %s119_s0, 4  ;;  %s49_s13 = int_to_ptr.vmem [resolvable:$true] %s48_s13 }
  0x10   :  { %s92_s14 = scalar_lea.vmem %s49_s13, 256  ;;  %p97_p6 = scmp.lt.s32.totalorder %s49_s13, %s49_s13 }
  0x11   :  { %66 = vpow2.f32 %v25_v2  ;;  %p93_p5 = scmp.ne.s32.totalorder %s49_s13, %s92_s14  ;;  %p98_p7 = scmp.lt.s32.totalorder %s92_s14, %s92_s14 }
  0x12   :  { %68 = vpow2.f32 %v27_v3 }
  0x13   :  { %p99_p8 = por %p98_p7, %p97_p6 }
  0x15   :  { %p100_p9 = pnand %p99_p8, %p93_p5 }
  0x1e   :  { %v67_v4 = vpop.eup %66 }
  0x1f   :  { %v69_v5 = vpop.eup %68  ;;  %v60_v6 = vadd.f32 -1.0, %v67_v4 }
  0x20   :  { %v61_v7 = vadd.f32 -1.0, %v69_v5 }
  0x21   :  { %v31_v8 = vmul.f32 %v60_v6, %v60_v6 }
  0x22   :  { %v32_v9 = vmul.f32 %v61_v7, %v61_v7 }
  0x24   :  { %v33_v10 = vadd.f32 %v32_v9, %v31_v8 }
  0x26   :  { %v34_v11 = vadd.f32 1e-05, %v33_v10 }
  0x28   :  { %70 = vrcp.f32 %v34_v11 }
  0x35   :  { %v71_v12 = vpop.eup %70 }
  0x36   :  { %v36_v13 = vmul.f32 %v71_v12, %v34_v11 }
  0x38   :  { %v37_v14 = vsub.f32 2.0, %v36_v13 }
  0x3a   :  { %v38_v15 = vmul.f32 %v71_v12, %v37_v14 }
  0x3c   :  { %v39_v16 = vmul.f32 %v38_v15, %v31_v8  ;;  %v40_v17 = vmul.f32 %v38_v15, %v32_v9 }
  0x3e   :  { %41 = vst [vmem:[#allocation5] sm:$0xff] %v39_v16  ;;  %42 = vst [vmem:[#allocation5 + $0x8] sm:$0xff] %v40_v17 }
  0x3f   :  { %103 = shalt.err (!%p100_p9)
}
  0x40   :  { %54 = dma.vmem_to_hbm [thread:$0]  %s49_s13, 256, %s143_s1, [#allocation4], %s117_s9, %s117_s9, %s118_s10  }
  0x41   :  { %114 = dma.done.wait [#allocation4], 256  }
  0x42   :  { %115 = vsyncadd [#allocation4], 4294967040 }
  0x43   :  { %58 = vsyncpa [#allocation3], 1 }
  0x44   :  { %59 = vsyncpa [#allocation4], 1 }

</bundles_post_ra>
